<compile_context>
chip_gen: v7x
topology: tpu7x:2x2x1
jax: 0.10.0
libtpu: 0.0.40
codegen_flags: <defaults>
</compile_context>

<pallas_src>
import jax
import jax.numpy as jnp
from jax.experimental import pallas as pl
from jax.experimental.pallas import tpu as pltpu

LEAK = 0.2
DROP_P = 0.3
KEEP_P = 1.0 - DROP_P
INV_KEEP_P = 1.0 / KEEP_P
NOUT = 128  # lane-dense output width; column 0 holds the real logit


def _round_up(x, m):
    return (x + m - 1) // m * m


def _pad2(a, rows, cols):
    pr, pc = rows - a.shape[0], cols - a.shape[1]
    if pr == 0 and pc == 0:
        return a
    return jnp.pad(a, ((0, pr), (0, pc)))


def discriminator_kernel(x_ref,
                         w1_ref, b1_ref, m1_ref,
                         w2_ref, b2_ref, m2_ref,
                         w3_ref, b3_ref, m3_ref,
                         w4_ref, b4_ref,
                         out_ref):
    def epilogue(h_f32, b_ref, m_ref):
        # f32 bias add, then packed bf16 leaky_relu + dropout-mask multiply.
        h = (h_f32 + b_ref[...]).astype(jnp.bfloat16)
        h = jnp.where(h > 0, h, LEAK * h)
        return h * m_ref[...]

    h = jnp.dot(x_ref[...], w1_ref[...], preferred_element_type=jnp.float32)
    h = epilogue(h, b1_ref, m1_ref)

    h = jnp.dot(h, w2_ref[...], preferred_element_type=jnp.float32)
    h = epilogue(h, b2_ref, m2_ref)

    h = jnp.dot(h, w3_ref[...], preferred_element_type=jnp.float32)
    h = epilogue(h, b3_ref, m3_ref)

    # fc4 on the MXU: w4 zero-padded to 128 output lanes -> lane-dense (TB, 128)
    # store (column 0 is the real logit; the wrapper slices it out).
    logits = jnp.dot(h, w4_ref[...], preferred_element_type=jnp.float32) + b4_ref[...]
    out_ref[...] = 1.0 / (1.0 + jnp.exp(-logits))


def init_discriminator_params(key, img_shape, hidden_dim):
    """Deterministic init mimicking nn.Linear default uniform(-1/sqrt(in), 1/sqrt(in)).

    Weights are stored as (in_features, out_features) — transpose of PyTorch's
    (out, in) — so the kernel computes x @ W directly.
    """
    in_dim = 1
    for d in img_shape:
        in_dim *= d
    dims = [in_dim, hidden_dim, hidden_dim // 2, hidden_dim // 4, 1]
    params = []
    for i in range(4):
        fan_in, fan_out = dims[i], dims[i + 1]
        key, kw, kb = jax.random.split(key, 3)
        bound = 1.0 / (fan_in ** 0.5)
        w = jax.random.uniform(kw, (fan_in, fan_out), jnp.float32, -bound, bound)
        b = jax.random.uniform(kb, (1, fan_out), jnp.float32, -bound, bound)
        params.append((w, b))
    return params


def _vmem_limit_bytes(TB, Dp, H1p, H2p, H3p):
    bf16, f32 = 2, 4
    weights = (Dp * H1p + H1p * H2p + H2p * H3p + H3p * NOUT) * bf16 \
              + (H1p + H2p + H3p + NOUT) * f32
    per_tile_in = (TB * Dp + TB * (H1p + H2p + H3p)) * bf16        # x + 3 masks
    per_tile_out = TB * NOUT * f32
    intermediates = TB * max(H1p, H2p, H3p) * (f32 + bf16) * 2
    est = 2 * weights + 2 * per_tile_in + 2 * per_tile_out + intermediates
    # generous headroom, clamped to stay inside v7x's 64 MiB physical VMEM
    return int(min(max(2 * est, 32 * 1024 * 1024), 64 * 1024 * 1024))


def discriminator_forward(img, params, *, key=None, training=True):
    B = img.shape[0]
    (w1, b1), (w2, b2), (w3, b3), (w4, b4) = params

    D, H1 = w1.shape
    H2, H3 = w2.shape[1], w3.shape[1]
    Dp, H1p, H2p, H3p = (_round_up(d, 128) for d in (D, H1, H2, H3))

    # Batch tiling: keep >=2 grid steps for megacore when the batch allows;
    # round tiny batches to a multiple of 16 (bf16 sublane packing).
    if B >= 2048:
        TB = 512
    elif B >= 512:
        TB = 256
    elif B >= 256:
        TB = 128
    else:
        TB = _round_up(max(B, 16), 16)
    Bp = _round_up(B, TB)

    # Flatten NCHW row-major (== img.view(B, -1)) straight to bf16; pad only if needed.
    x = _pad2(img.reshape(B, -1).astype(jnp.bfloat16), Bp, Dp)

    # Inverted dropout: {0,1} bf16 masks; the 1/keep scale is folded into the next
    # layer's weights below, so the kernel only does a single multiply per layer.
    if training:
        if key is None:
            key = jax.random.PRNGKey(0)
        k1, k2, k3 = jax.random.split(key, 3)
        m1 = jax.random.bernoulli(k1, KEEP_P, (Bp, H1p)).astype(jnp.bfloat16)
        m2 = jax.random.bernoulli(k2, KEEP_P, (Bp, H2p)).astype(jnp.bfloat16)
        m3 = jax.random.bernoulli(k3, KEEP_P, (Bp, H3p)).astype(jnp.bfloat16)
        wscale = INV_KEEP_P
    else:
        m1 = jnp.ones((Bp, H1p), jnp.bfloat16)
        m2 = jnp.ones((Bp, H2p), jnp.bfloat16)
        m3 = jnp.ones((Bp, H3p), jnp.bfloat16)
        wscale = 1.0

    # bf16 weights (f32 MXU accumulation), f32 biases.  wscale applied to layers that
    # consume a dropped-out activation (fc2, fc3, fc4).
    w1p = _pad2(w1, Dp, H1p).astype(jnp.bfloat16)
    b1p = _pad2(b1, 1, H1p).astype(jnp.float32)
    w2p = _pad2(w2 * wscale, H1p, H2p).astype(jnp.bfloat16)
    b2p = _pad2(b2, 1, H2p).astype(jnp.float32)
    w3p = _pad2(w3 * wscale, H2p, H3p).astype(jnp.bfloat16)
    b3p = _pad2(b3, 1, H3p).astype(jnp.float32)
    w4p = _pad2(w4 * wscale, H3p, NOUT).astype(jnp.bfloat16)   # (H3p, 128), col 0 real
    b4p = _pad2(b4, 1, NOUT).astype(jnp.float32)

    def tile_spec(h):
        return pl.BlockSpec((TB, h), lambda i: (i, 0))

    def const_spec(shape):
        # Constant block index => weight/bias stays VMEM-resident across grid steps
        # (not re-DMA'd per step).
        return pl.BlockSpec(shape, lambda i: (0, 0))

    out = pl.pallas_call(
        discriminator_kernel,
        out_shape=jax.ShapeDtypeStruct((Bp, NOUT), jnp.float32),
        grid=(Bp // TB,),
        in_specs=[
            tile_spec(Dp),                                   # x tile
            const_spec((Dp, H1p)), const_spec((1, H1p)), tile_spec(H1p),
            const_spec((H1p, H2p)), const_spec((1, H2p)), tile_spec(H2p),
            const_spec((H2p, H3p)), const_spec((1, H3p)), tile_spec(H3p),
            const_spec((H3p, NOUT)), const_spec((1, NOUT)),
        ],
        out_specs=pl.BlockSpec((TB, NOUT), lambda i: (i, 0)),  # lane-dense output
        compiler_params=pltpu.CompilerParams(
            dimension_semantics=("parallel",),               # megacore-shard batch tiles
            vmem_limit_bytes=_vmem_limit_bytes(TB, Dp, H1p, H2p, H3p)),
    )(x, w1p, b1p, m1, w2p, b2p, m2, w3p, b3p, m3, w4p, b4p)

    return out[:B, :1]


if __name__ == "__main__":
    key = jax.random.PRNGKey(0)
    k_img, k_params, k_drop = jax.random.split(key, 3)

    img_shape = (1, 16, 16)   # (C, H, W) -> in_dim = 256
    hidden_dim = 64           # small synthetic hidden size (module default is 1024)
    B = 2

    img = jax.random.normal(k_img, (B,) + img_shape, dtype=jnp.float32)  # NCHW
    params = init_discriminator_params(k_params, img_shape, hidden_dim)

    out = discriminator_forward(img, params, key=k_drop, training=True)
    out = jax.block_until_ready(out)

    assert out.shape == (B, 1)
    assert bool(jnp.all((out >= 0.0) & (out <= 1.0)))
    assert bool(jnp.all(jnp.isfinite(out)))
    print("KERNEL_OK")
</pallas_src>

<mosaic_0001>
module attributes {stable_mosaic.version = 11 : i64} {
  func.func @discriminator_kernel(%arg0: i32, %arg1: memref<16x256xbf16, #tpu.memory_space<vmem>>, %arg2: memref<256x128xbf16, #tpu.memory_space<vmem>>, %arg3: memref<1x128xf32, #tpu.memory_space<vmem>>, %arg4: memref<16x128xbf16, #tpu.memory_space<vmem>>, %arg5: memref<128x128xbf16, #tpu.memory_space<vmem>>, %arg6: memref<1x128xf32, #tpu.memory_space<vmem>>, %arg7: memref<16x128xbf16, #tpu.memory_space<vmem>>, %arg8: memref<128x128xbf16, #tpu.memory_space<vmem>>, %arg9: memref<1x128xf32, #tpu.memory_space<vmem>>, %arg10: memref<16x128xbf16, #tpu.memory_space<vmem>>, %arg11: memref<128x128xbf16, #tpu.memory_space<vmem>>, %arg12: memref<1x128xf32, #tpu.memory_space<vmem>>, %arg13: memref<16x128xf32, #tpu.memory_space<vmem>>) attributes {dimension_semantics = [#tpu.dimension_semantics<parallel>], iteration_bounds = array<i64: 1>, scalar_prefetch = 0 : i64, scratch_operands = 0 : i64, tpu.core_type = #tpu.core_type<tc>, window_params = [{transform_indices = @transform_0, window_bounds = array<i64: 16, 256>}, {pipeline_mode = #tpu.pipeline_mode<synchronous>, transform_indices = @transform_1, window_bounds = array<i64: 256, 128>}, {pipeline_mode = #tpu.pipeline_mode<synchronous>, transform_indices = @transform_2, window_bounds = array<i64: 1, 128>}, {transform_indices = @transform_3, window_bounds = array<i64: 16, 128>}, {pipeline_mode = #tpu.pipeline_mode<synchronous>, transform_indices = @transform_4, window_bounds = array<i64: 128, 128>}, {pipeline_mode = #tpu.pipeline_mode<synchronous>, transform_indices = @transform_5, window_bounds = array<i64: 1, 128>}, {transform_indices = @transform_6, window_bounds = array<i64: 16, 128>}, {pipeline_mode = #tpu.pipeline_mode<synchronous>, transform_indices = @transform_7, window_bounds = array<i64: 128, 128>}, {pipeline_mode = #tpu.pipeline_mode<synchronous>, transform_indices = @transform_8, window_bounds = array<i64: 1, 128>}, {transform_indices = @transform_9, window_bounds = array<i64: 16, 128>}, {pipeline_mode = #tpu.pipeline_mode<synchronous>, transform_indices = @transform_10, window_bounds = array<i64: 128, 128>}, {pipeline_mode = #tpu.pipeline_mode<synchronous>, transform_indices = @transform_11, window_bounds = array<i64: 1, 128>}, {transform_indices = @transform_12, window_bounds = array<i64: 16, 128>}]} {
    %c0 = arith.constant 0 : index
    %c0_0 = arith.constant 0 : index
    %0 = vector.load %arg1[%c0, %c0_0] : memref<16x256xbf16, #tpu.memory_space<vmem>>, vector<16x256xbf16>
    %c0_1 = arith.constant 0 : index
    %c0_2 = arith.constant 0 : index
    %1 = vector.load %arg2[%c0_1, %c0_2] : memref<256x128xbf16, #tpu.memory_space<vmem>>, vector<256x128xbf16>
    %cst = arith.constant dense<0.000000e+00> : vector<16x128xf32>
    %2 = tpu.matmul %0, %1, %cst {dimension_numbers = #tpu.dot_dimension_numbers<[1], [0], [0], [1], [0, 0, 1, 1], [], []>} : vector<16x256xbf16>, vector<256x128xbf16>, vector<16x128xf32> -> vector<16x128xf32>
    %c0_3 = arith.constant 0 : index
    %c0_4 = arith.constant 0 : index
    %3 = vector.load %arg3[%c0_3, %c0_4] : memref<1x128xf32, #tpu.memory_space<vmem>>, vector<1x128xf32>
    %4 = vector.broadcast %3 : vector<1x128xf32> to vector<16x128xf32>
    %5 = arith.addf %2, %4 : vector<16x128xf32>
    %6 = arith.truncf %5 : vector<16x128xf32> to vector<16x128xbf16>
    %cst_5 = arith.constant 0.000000e+00 : bf16
    %7 = vector.broadcast %cst_5 : bf16 to vector<16x128xbf16>
    %8 = arith.cmpf ogt, %6, %7 : vector<16x128xbf16>
    %cst_6 = arith.constant 2.001950e-01 : bf16
    %9 = vector.broadcast %cst_6 : bf16 to vector<16x128xbf16>
    %10 = arith.mulf %9, %6 : vector<16x128xbf16>
    %11 = arith.select %8, %6, %10 : vector<16x128xi1>, vector<16x128xbf16>
    %c0_7 = arith.constant 0 : index
    %c0_8 = arith.constant 0 : index
    %12 = vector.load %arg4[%c0_7, %c0_8] : memref<16x128xbf16, #tpu.memory_space<vmem>>, vector<16x128xbf16>
    %13 = arith.mulf %11, %12 : vector<16x128xbf16>
    %c0_9 = arith.constant 0 : index
    %c0_10 = arith.constant 0 : index
    %14 = vector.load %arg5[%c0_9, %c0_10] : memref<128x128xbf16, #tpu.memory_space<vmem>>, vector<128x128xbf16>
    %cst_11 = arith.constant dense<0.000000e+00> : vector<16x128xf32>
    %15 = tpu.matmul %13, %14, %cst_11 {dimension_numbers = #tpu.dot_dimension_numbers<[1], [0], [0], [1], [0, 0, 1, 1], [], []>} : vector<16x128xbf16>, vector<128x128xbf16>, vector<16x128xf32> -> vector<16x128xf32>
    %c0_12 = arith.constant 0 : index
    %c0_13 = arith.constant 0 : index
    %16 = vector.load %arg6[%c0_12, %c0_13] : memref<1x128xf32, #tpu.memory_space<vmem>>, vector<1x128xf32>
    %17 = vector.broadcast %16 : vector<1x128xf32> to vector<16x128xf32>
    %18 = arith.addf %15, %17 : vector<16x128xf32>
    %19 = arith.truncf %18 : vector<16x128xf32> to vector<16x128xbf16>
    %cst_14 = arith.constant 0.000000e+00 : bf16
    %20 = vector.broadcast %cst_14 : bf16 to vector<16x128xbf16>
    %21 = arith.cmpf ogt, %19, %20 : vector<16x128xbf16>
    %cst_15 = arith.constant 2.001950e-01 : bf16
    %22 = vector.broadcast %cst_15 : bf16 to vector<16x128xbf16>
    %23 = arith.mulf %22, %19 : vector<16x128xbf16>
    %24 = arith.select %21, %19, %23 : vector<16x128xi1>, vector<16x128xbf16>
    %c0_16 = arith.constant 0 : index
    %c0_17 = arith.constant 0 : index
    %25 = vector.load %arg7[%c0_16, %c0_17] : memref<16x128xbf16, #tpu.memory_space<vmem>>, vector<16x128xbf16>
    %26 = arith.mulf %24, %25 : vector<16x128xbf16>
    %c0_18 = arith.constant 0 : index
    %c0_19 = arith.constant 0 : index
    %27 = vector.load %arg8[%c0_18, %c0_19] : memref<128x128xbf16, #tpu.memory_space<vmem>>, vector<128x128xbf16>
    %cst_20 = arith.constant dense<0.000000e+00> : vector<16x128xf32>
    %28 = tpu.matmul %26, %27, %cst_20 {dimension_numbers = #tpu.dot_dimension_numbers<[1], [0], [0], [1], [0, 0, 1, 1], [], []>} : vector<16x128xbf16>, vector<128x128xbf16>, vector<16x128xf32> -> vector<16x128xf32>
    %c0_21 = arith.constant 0 : index
    %c0_22 = arith.constant 0 : index
    %29 = vector.load %arg9[%c0_21, %c0_22] : memref<1x128xf32, #tpu.memory_space<vmem>>, vector<1x128xf32>
    %30 = vector.broadcast %29 : vector<1x128xf32> to vector<16x128xf32>
    %31 = arith.addf %28, %30 : vector<16x128xf32>
    %32 = arith.truncf %31 : vector<16x128xf32> to vector<16x128xbf16>
    %cst_23 = arith.constant 0.000000e+00 : bf16
    %33 = vector.broadcast %cst_23 : bf16 to vector<16x128xbf16>
    %34 = arith.cmpf ogt, %32, %33 : vector<16x128xbf16>
    %cst_24 = arith.constant 2.001950e-01 : bf16
    %35 = vector.broadcast %cst_24 : bf16 to vector<16x128xbf16>
    %36 = arith.mulf %35, %32 : vector<16x128xbf16>
    %37 = arith.select %34, %32, %36 : vector<16x128xi1>, vector<16x128xbf16>
    %c0_25 = arith.constant 0 : index
    %c0_26 = arith.constant 0 : index
    %38 = vector.load %arg10[%c0_25, %c0_26] : memref<16x128xbf16, #tpu.memory_space<vmem>>, vector<16x128xbf16>
    %39 = arith.mulf %37, %38 : vector<16x128xbf16>
    %c0_27 = arith.constant 0 : index
    %c0_28 = arith.constant 0 : index
    %40 = vector.load %arg11[%c0_27, %c0_28] : memref<128x128xbf16, #tpu.memory_space<vmem>>, vector<128x128xbf16>
    %cst_29 = arith.constant dense<0.000000e+00> : vector<16x128xf32>
    %41 = tpu.matmul %39, %40, %cst_29 {dimension_numbers = #tpu.dot_dimension_numbers<[1], [0], [0], [1], [0, 0, 1, 1], [], []>} : vector<16x128xbf16>, vector<128x128xbf16>, vector<16x128xf32> -> vector<16x128xf32>
    %c0_30 = arith.constant 0 : index
    %c0_31 = arith.constant 0 : index
    %42 = vector.load %arg12[%c0_30, %c0_31] : memref<1x128xf32, #tpu.memory_space<vmem>>, vector<1x128xf32>
    %43 = vector.broadcast %42 : vector<1x128xf32> to vector<16x128xf32>
    %44 = arith.addf %41, %43 : vector<16x128xf32>
    %cst_32 = arith.constant 0.000000e+00 : f32
    %45 = vector.broadcast %cst_32 : f32 to vector<16x128xf32>
    %46 = arith.subf %45, %44 : vector<16x128xf32>
    %47 = math.exp %46 : vector<16x128xf32>
    %cst_33 = arith.constant 1.000000e+00 : f32
    %48 = vector.broadcast %cst_33 : f32 to vector<16x128xf32>
    %49 = arith.addf %48, %47 : vector<16x128xf32>
    %cst_34 = arith.constant 1.000000e+00 : f32
    %50 = vector.broadcast %cst_34 : f32 to vector<16x128xf32>
    %51 = arith.divf %50, %49 : vector<16x128xf32>
    %c0_35 = arith.constant 0 : index
    %c0_36 = arith.constant 0 : index
    %52 = vector.load %arg13[%c0_35, %c0_36] : memref<16x128xf32, #tpu.memory_space<vmem>>, vector<16x128xf32>
    tpu.vector_store %arg13[%c0_35, %c0_36], %51 {strides = array<i32>} : memref<16x128xf32, #tpu.memory_space<vmem>>, vector<16x128xf32>,
    return
  }
  func.func @transform_0(%arg0: i32) -> (i32, i32) {
    %c0_i32 = arith.constant 0 : i32
    %c0_i32_0 = arith.constant 0 : i32
    return %arg0, %c0_i32 : i32, i32
  }
  func.func @transform_1(%arg0: i32) -> (i32, i32) {
    %c0_i32 = arith.constant 0 : i32
    %c0_i32_0 = arith.constant 0 : i32
    %c0_i32_1 = arith.constant 0 : i32
    return %c0_i32, %c0_i32_0 : i32, i32
  }
  func.func @transform_2(%arg0: i32) -> (i32, i32) {
    %c0_i32 = arith.constant 0 : i32
    %c0_i32_0 = arith.constant 0 : i32
    %c0_i32_1 = arith.constant 0 : i32
    return %c0_i32, %c0_i32_0 : i32, i32
  }
  func.func @transform_3(%arg0: i32) -> (i32, i32) {
    %c0_i32 = arith.constant 0 : i32
    %c0_i32_0 = arith.constant 0 : i32
    return %arg0, %c0_i32 : i32, i32
  }
  func.func @transform_4(%arg0: i32) -> (i32, i32) {
    %c0_i32 = arith.constant 0 : i32
    %c0_i32_0 = arith.constant 0 : i32
    %c0_i32_1 = arith.constant 0 : i32
    return %c0_i32, %c0_i32_0 : i32, i32
  }
  func.func @transform_5(%arg0: i32) -> (i32, i32) {
    %c0_i32 = arith.constant 0 : i32
    %c0_i32_0 = arith.constant 0 : i32
    %c0_i32_1 = arith.constant 0 : i32
    return %c0_i32, %c0_i32_0 : i32, i32
  }
  func.func @transform_6(%arg0: i32) -> (i32, i32) {
    %c0_i32 = arith.constant 0 : i32
    %c0_i32_0 = arith.constant 0 : i32
    return %arg0, %c0_i32 : i32, i32
  }
  func.func @transform_7(%arg0: i32) -> (i32, i32) {
    %c0_i32 = arith.constant 0 : i32
    %c0_i32_0 = arith.constant 0 : i32
    %c0_i32_1 = arith.constant 0 : i32
    return %c0_i32, %c0_i32_0 : i32, i32
  }
  func.func @transform_8(%arg0: i32) -> (i32, i32) {
    %c0_i32 = arith.constant 0 : i32
    %c0_i32_0 = arith.constant 0 : i32
    %c0_i32_1 = arith.constant 0 : i32
    return %c0_i32, %c0_i32_0 : i32, i32
  }
  func.func @transform_9(%arg0: i32) -> (i32, i32) {
    %c0_i32 = arith.constant 0 : i32
    %c0_i32_0 = arith.constant 0 : i32
    return %arg0, %c0_i32 : i32, i32
  }
  func.func @transform_10(%arg0: i32) -> (i32, i32) {
    %c0_i32 = arith.constant 0 : i32
    %c0_i32_0 = arith.constant 0 : i32
    %c0_i32_1 = arith.constant 0 : i32
    return %c0_i32, %c0_i32_0 : i32, i32
  }
  func.func @transform_11(%arg0: i32) -> (i32, i32) {
    %c0_i32 = arith.constant 0 : i32
    %c0_i32_0 = arith.constant 0 : i32
    %c0_i32_1 = arith.constant 0 : i32
    return %c0_i32, %c0_i32_0 : i32, i32
  }
  func.func @transform_12(%arg0: i32) -> (i32, i32) {
    %c0_i32 = arith.constant 0 : i32
    %c0_i32_0 = arith.constant 0 : i32
    return %arg0, %c0_i32 : i32, i32
  }
}

</mosaic_0001>

<bundles_post_ra>
// kernel: tpu_custom_call.1
= control target key start
LH: loop header
LB: loop body
LE: loop exit
PB: predicated region body
PF: predicated region fallthrough
CT: control target
= control target key end

     0   :  { %17 = vsyncpa [#allocation3], 0  ;;  %s1290_s0 = inlined_call_operand.hbm [shape: bf16[16,256], index: 0, kind: input, shape index: {}]   ;;  %s1291_s1 = inlined_call_operand.hbm [shape: bf16[256,128], index: 1, kind: input, shape index: {}]   ;;  %s1292_s2 = inlined_call_operand.vmem [shape: f32[1,128], index: 2, kind: input, shape index: {}]   ;;  %s1293_s3 = inlined_call_operand.vmem [shape: bf16[16,128], index: 3, kind: input, shape index: {}]   ;;  %s1294_s4 = inlined_call_operand.hbm [shape: bf16[128,128], index: 4, kind: input, shape index: {}]   ;;  %s1295_s5 = inlined_call_operand.vmem [shape: f32[1,128], index: 5, kind: input, shape index: {}]   ;;  %s1296_s6 = inlined_call_operand.vmem [shape: bf16[16,128], index: 6, kind: input, shape index: {}]   ;;  %s1297_s7 = inlined_call_operand.hbm [shape: bf16[128,128], index: 7, kind: input, shape index: {}]   ;;  %s1298_s8 = inlined_call_operand.vmem [shape: f32[1,128], index: 8, kind: input, shape index: {}]   ;;  %s1299_s9 = inlined_call_operand.vmem [shape: bf16[16,128], index: 9, kind: input, shape index: {}]   ;;  %s1300_s10 = inlined_call_operand.hbm [shape: bf16[128,128], index: 10, kind: input, shape index: {}]   ;;  %s1301_s11 = inlined_call_operand.vmem [shape: f32[1,128], index: 11, kind: input, shape index: {}]   ;;  %s1302_s12 = inlined_call_operand.hbm [shape: f32[16,128], index: 12, kind: output, shape index: {}]  }
   0x1   :  { %18 = vsyncpa [#allocation6], 0 }
   0x2   :  { %19 = vsyncpa [#allocation9], 0 }
   0x3   :  { %20 = vsyncpa [#allocation4], 0  ;;  %s1072_s21 = smov [#allocation5]   ;;  %s932_s25 = scalar_lea.hbm %s1291_s1, 2048 }
   0x4   :  { %s38_s22 = sshll.u32 %s1072_s21, 4  ;;  %p933_p0 = scmp.ne.s32.totalorder %s1291_s1, %s932_s25  ;;  %s39_s22 = int_to_ptr.vmem [resolvable:$true] %s38_s22 }
   0x5   :  { %p936_p1 = scmp.lt.u32.totalorder %s932_s25, %s1291_s1 }
   0x7   :  { %p938_p2 = pnand %p936_p1, %p933_p0 }
   0x9   :  { %941 = shalt.err (!%p938_p2)
}
   0xa   :  { %s942_s30 = scalar_lea.vmem %s39_s22, 2048  ;;  %p947_p4 = scmp.lt.s32.totalorder %s39_s22, %s39_s22 }
   0xb   :  { %p943_p3 = scmp.ne.s32.totalorder %s39_s22, %s942_s30  ;;  %p948_p5 = scmp.lt.s32.totalorder %s942_s30, %s942_s30 }
   0xd   :  { %p949_p6 = por %p948_p5, %p947_p4 }
   0xf   :  { %p950_p7 = pnand %p949_p6, %p943_p3 }
  0x11   :  { %953 = shalt.err (!%p950_p7)
}
  0x12   :  { %s1073_s13 = smov 64   ;;  %s1074_s14 = smov 4  }
  0x13   :  { %44 = dma.hbm_to_vmem [thread:$0]  %s1291_s1, 2048, %s39_s22, [#allocation6], %s1073_s13, %s1073_s13, %s1074_s14  }
  0x14   :  { %s1075_s17 = smov [#allocation8]   ;;  %s1076_s19 = smov [#allocation2]  }
  0x15   :  { %s70_s18 = sshll.u32 %s1075_s17, 4  ;;  %s26_s20 = sshll.u32 %s1076_s19, 4  ;;  %s71_s18 = int_to_ptr.vmem [resolvable:$true] %s70_s18  ;;  %s27_s20 = int_to_ptr.vmem [resolvable:$true] %s26_s20 }
  0x16   :  { %s954_s24 = scalar_lea.hbm %s1297_s7, 1024 }
  0x17   :  { %p955_p8 = scmp.ne.s32.totalorder %s1297_s7, %s954_s24  ;;  %p958_p9 = scmp.lt.u32.totalorder %s954_s24, %s1297_s7 }
  0x19   :  { %p960_p10 = pnand %p958_p9, %p955_p8 }
  0x1b   :  { %963 = shalt.err (!%p960_p10)
}
  0x1c   :  { %s964_s1 = scalar_lea.vmem %s71_s18, 1024  ;;  %p969_p12 = scmp.lt.s32.totalorder %s71_s18, %s71_s18 }
  0x1d   :  { %p965_p11 = scmp.ne.s32.totalorder %s71_s18, %s964_s1  ;;  %p970_p13 = scmp.lt.s32.totalorder %s964_s1, %s964_s1 }
  0x1f   :  { %p971_p0 = por %p970_p13, %p969_p12 }
  0x21   :  { %p972_p1 = pnand %p971_p0, %p965_p11 }
  0x23   :  { %975 = shalt.err (!%p972_p1)
}
  0x24   :  { %76 = dma.hbm_to_vmem [thread:$0]  %s1297_s7, 1024, %s71_s18, [#allocation9], %s1073_s13, %s1073_s13, %s1074_s14  }
  0x25   :  { %s976_s16 = scalar_lea.hbm %s1290_s0, 256 }
  0x26   :  { %p977_p2 = scmp.ne.s32.totalorder %s1290_s0, %s976_s16  ;;  %p980_p3 = scmp.lt.u32.totalorder %s976_s16, %s1290_s0 }
  0x28   :  { %p982_p4 = pnand %p980_p3, %p977_p2 }
  0x2a   :  { %985 = shalt.err (!%p982_p4)
}
  0x2b   :  { %s986_s24 = scalar_lea.vmem %s27_s20, 256  ;;  %p991_p6 = scmp.lt.s32.totalorder %s27_s20, %s27_s20 }
  0x2c   :  { %p987_p5 = scmp.ne.s32.totalorder %s27_s20, %s986_s24  ;;  %p992_p7 = scmp.lt.s32.totalorder %s986_s24, %s986_s24 }
  0x2e   :  { %p993_p8 = por %p992_p7, %p991_p6 }
  0x30   :  { %p994_p9 = pnand %p993_p8, %p987_p5 }
  0x32   :  { %997 = shalt.err (!%p994_p9)
}
  0x33   :  { %s1077_s7 = smov 128   ;;  %s1078_s18 = smov 8  }
  0x34   :  { %32 = dma.hbm_to_vmem [thread:$0]  %s1290_s0, 256, %s27_s20, [#allocation3], %s1077_s7, %s1077_s7, %s1078_s18  }
  0x35   :  { %s1079_s27 = smov [#allocation7]   ;;  %s1080_s1 = smov [#allocation10]  }
  0x36   :  { %s54_s28 = sshll.u32 %s1079_s27, 4  ;;  %s86_s22 = sshll.u32 %s1080_s1, 4  ;;  %s55_s28 = int_to_ptr.vmem [resolvable:$true] %s54_s28  ;;  %s87_s22 = int_to_ptr.vmem [resolvable:$true] %s86_s22 }
  0x37   :  { %s998_s15 = scalar_lea.hbm %s1294_s4, 1024 }
  0x38   :  { %p999_p10 = scmp.ne.s32.totalorder %s1294_s4, %s998_s15  ;;  %p1002_p11 = scmp.lt.u32.totalorder %s998_s15, %s1294_s4 }
  0x3a   :  { %p1004_p12 = pnand %p1002_p11, %p999_p10 }
  0x3c   :  { %1007 = shalt.err (!%p1004_p12)
}
  0x3d   :  { %s1008_s0 = scalar_lea.vmem %s55_s28, 1024  ;;  %p1013_p0 = scmp.lt.s32.totalorder %s55_s28, %s55_s28 }
  0x3e   :  { %p1009_p13 = scmp.ne.s32.totalorder %s55_s28, %s1008_s0  ;;  %p1014_p1 = scmp.lt.s32.totalorder %s1008_s0, %s1008_s0 }
  0x40   :  { %p1015_p2 = por %p1014_p1, %p1013_p0 }
  0x42   :  { %p1016_p3 = pnand %p1015_p2, %p1009_p13 }
  0x44   :  { %1019 = shalt.err (!%p1016_p3)
}
  0x45   :  { %60 = dma.hbm_to_vmem [thread:$0]  %s1294_s4, 1024, %s55_s28, [#allocation6], %s1073_s13, %s1073_s13, %s1074_s14  }
  0x46   :  { %s1020_s26 = scalar_lea.hbm %s1300_s10, 1024 }
  0x47   :  { %p1021_p4 = scmp.ne.s32.totalorder %s1300_s10, %s1020_s26  ;;  %p1024_p5 = scmp.lt.u32.totalorder %s1020_s26, %s1300_s10 }
  0x49   :  { %p1026_p6 = pnand %p1024_p5, %p1021_p4 }
  0x4b   :  { %1029 = shalt.err (!%p1026_p6)
}
  0x4c   :  { %s1030_s15 = scalar_lea.vmem %s87_s22, 1024  ;;  %p1035_p8 = scmp.lt.s32.totalorder %s87_s22, %s87_s22 }
  0x4d   :  { %p1031_p7 = scmp.ne.s32.totalorder %s87_s22, %s1030_s15  ;;  %p1036_p9 = scmp.lt.s32.totalorder %s1030_s15, %s1030_s15 }
  0x4f   :  { %p1037_p10 = por %p1036_p9, %p1035_p8 }
  0x51   :  { %p1038_p11 = pnand %p1037_p10, %p1031_p7 }
  0x53   :  { %1041 = shalt.err (!%p1038_p11)
}
  0x54   :  { %92 = dma.hbm_to_vmem [thread:$0]  %s1300_s10, 1024, %s87_s22, [#allocation9], %s1073_s13, %s1073_s13, %s1074_s14  }
  0x55   :  { %1064 = dma.done.wait [#allocation3], 256  }
  0x56   :  { %1065 = vsyncadd [#allocation3], 4294967040 }
  0x57   :  { %1066 = dma.done.wait [#allocation6], 3072  }
  0x58   :  { %1067 = vsyncadd [#allocation6], 4294964224 }
  0x59   :  { %1068 = dma.done.wait [#allocation9], 2048  }
  0x5a   :  { %1069 = vsyncadd [#allocation9], 4294965248  ;;  %v1081_v0 = vmov 0.0   ;;  %v878_v1 = vld [vmem:[#allocation5 + $0x40] sm:$0xff]   ;;  %v880_v3 = vld [vmem:[#allocation5 + $0x48] sm:$0xff]   ;;  %vm1082_vm0 = vmmov 0  }
  0x5b   :  { %806 = vmatprep.subr.bf16.mxu1 %v1081_v0  ;;  %v879_v2 = vld [vmem:[#allocation5] sm:$0xff]   ;;  %757 = vmatprep.subr.bf16.mxu0 %v878_v1  ;;  %v881_v4 = vld [vmem:[#allocation5 + $0x8] sm:$0xff]   ;;  %v882_v5 = vld [vmem:[#allocation5 + $0x50] sm:$0xff]  }
  0x5c   :  { %758 = vmatpush3.bf16.msra.mxu0 %v879_v2  ;;  %v883_v6 = vld [vmem:[#allocation5 + $0x10] sm:$0xff]   ;;  %v884_v7 = vld [vmem:[#allocation5 + $0x58] sm:$0xff]   ;;  %v886_v9 = vld [vmem:[#allocation5 + $0x60] sm:$0xff]   ;;  %822 = vmatprep.mubr.msk.bf16.mxu1 %vm1082_vm0, %v1081_v0 }
  0x5d   :  { %759 = vmatprep.subr.bf16.mxu0 %v880_v3  ;;  %v885_v8 = vld [vmem:[#allocation5 + $0x18] sm:$0xff]   ;;  %v887_v10 = vld [vmem:[#allocation5 + $0x20] sm:$0xff]   ;;  %v888_v11 = vld [vmem:[#allocation5 + $0x68] sm:$0xff]  }
  0x5e   :  { %v889_v12 = vld [vmem:[#allocation5 + $0x28] sm:$0xff]   ;;  %v896_v13 = vld [vmem:[#allocation2 + $0x4] ss:$8 sps:$4 sm:$0xff]   ;;  %v897_v14 = vld [vmem:[#allocation7] sm:$0xff]  }
  0x5f   :  { %v890_v15 = vld [vmem:[#allocation5 + $0x70] sm:$0xff]   ;;  %291 = vmatprep.mubr.bf16.mxu0 %v896_v13  ;;  %807 = vmatpush3.bf16.msra.mxu1 %v897_v14  ;;  %v898_v16 = vld [vmem:[#allocation7 + $0x8] sm:$0xff]   ;;  %v892_v18 = vld [vmem:[#allocation5 + $0x78] sm:$0xff]  }
  0x60   :  { %760 = vmatpush3.bf16.msra.mxu0 %v881_v4  ;;  %v891_v17 = vld [vmem:[#allocation5 + $0x30] sm:$0xff]   ;;  %808 = vmatprep.subr.bf16.mxu1 %v1081_v0  ;;  %v893_v20 = vld [vmem:[#allocation5 + $0x38] sm:$0xff]   ;;  %v901_v23 = vld [vmem:[#allocation7 + $0x20] sm:$0xff]  }
  0x61   :  { %761 = vmatprep.subr.bf16.mxu0 %v882_v5  ;;  %v899_v19 = vld [vmem:[#allocation7 + $0x10] sm:$0xff]   ;;  %v900_v21 = vld [vmem:[#allocation7 + $0x18] sm:$0xff]   ;;  %v902_v24 = vld [vmem:[#allocation7 + $0x28] sm:$0xff]  }
  0x62   :  { %v894_v22 = vld [vmem:[#allocation2] ss:$8 sps:$4 sm:$0xff]   ;;  %v906_v27 = vld [vmem:[#allocation8] sm:$0xff]   ;;  %v907_v28 = vld [vmem:[#allocation8 + $0x8] sm:$0xff]  }
  0x63   :  { %809 = vmatpush3.bf16.msra.mxu1 %v898_v16  ;;  %v903_v25 = vld [vmem:[#allocation7 + $0x30] sm:$0xff]   ;;  %v904_v26 = vld [vmem:[#allocation7 + $0x38] sm:$0xff]   ;;  %v910_v31 = vld [vmem:[#allocation8 + $0x20] sm:$0xff]  }
  0x64   :  { %762 = vmatpush3.bf16.msra.mxu0 %v883_v6  ;;  %810 = vmatprep.subr.bf16.mxu1 %v1081_v0  ;;  %v908_v29 = vld [vmem:[#allocation8 + $0x10] sm:$0xff]   ;;  %v909_v30 = vld [vmem:[#allocation8 + $0x18] sm:$0xff]   ;;  %v911_v46 = vld [vmem:[#allocation8 + $0x28] sm:$0xff]  }
  0x65   :  { %763 = vmatprep.subr.bf16.mxu0 %v884_v7  ;;  %v708_v36 = vld [vmem:[%s1292_s2] ss:$0 sm:$0xff]  ;;  %v913_v48 = vld [vmem:[#allocation8 + $0x38] sm:$0xff]   ;;  %v915_v49 = vld [vmem:[#allocation10] sm:$0xff]  }
  0x66   :  { %v905_v42 = vld [vmem:[%s1293_s3] sm:$0xff]   ;;  %v916_v50 = vld [vmem:[#allocation10 + $0x8] sm:$0xff]   ;;  %v918_v52 = vld [vmem:[#allocation10 + $0x18] sm:$0xff]  }
  0x67   :  { %811 = vmatpush3.bf16.msra.mxu1 %v899_v19  ;;  %v912_v47 = vld [vmem:[#allocation8 + $0x30] sm:$0xff]   ;;  %v919_v53 = vld [vmem:[#allocation10 + $0x20] sm:$0xff]   ;;  %v920_v3 = vld [vmem:[#allocation10 + $0x28] sm:$0xff]  }
  0x68   :  { %764 = vmatpush3.bf16.msra.mxu0 %v885_v8  ;;  %812 = vmatprep.subr.bf16.mxu1 %v1081_v0  ;;  %v917_v51 = vld [vmem:[#allocation10 + $0x10] sm:$0xff]   ;;  %v922_v5 = vld [vmem:[#allocation10 + $0x38] sm:$0xff]  }
  0x69   :  { %765 = vmatprep.subr.bf16.mxu0 %v886_v9  ;;  %v728_v54 = vld [vmem:[%s1295_s5] ss:$0 sm:$0xff] }
  0x6a   :  { %v914_v62 = vld [vmem:[%s1296_s6] sm:$0xff]  }
  0x6b   :  { %813 = vmatpush3.bf16.msra.mxu1 %v900_v21  ;;  %v921_v4 = vld [vmem:[#allocation10 + $0x30] sm:$0xff]  }
  0x6c   :  { %766 = vmatpush3.bf16.msra.mxu0 %v887_v10  ;;  %814 = vmatprep.subr.bf16.mxu1 %v1081_v0  ;;  %v738_v6 = vld [vmem:[%s1298_s8] ss:$0 sm:$0xff]  ;;  %s1083_s8 = smov [#allocation11]  }
  0x6d   :  { %767 = vmatprep.subr.bf16.mxu0 %v888_v11  ;;  %v923_v14 = vld [vmem:[%s1299_s9] sm:$0xff]   ;;  %s694_s9 = sshll.u32 %s1083_s8, 4  ;;  %s695_s9 = int_to_ptr.vmem [resolvable:$true] %s694_s9 }
  0x6e   :  { %p1047_p13 = scmp.lt.s32.totalorder %s695_s9, %s695_s9 }
  0x6f   :  { %815 = vmatpush3.bf16.msra.mxu1 %v901_v23 }
  0x70   :  { %768 = vmatpush3.bf16.msra.mxu0 %v889_v12  ;;  %816 = vmatprep.subr.bf16.mxu1 %v1081_v0 }
  0x71   :  { %769 = vmatprep.subr.bf16.mxu0 %v890_v15 }
  0x73   :  { %817 = vmatpush3.bf16.msra.mxu1 %v902_v24 }
  0x74   :  { %770 = vmatpush3.bf16.msra.mxu0 %v891_v17  ;;  %818 = vmatprep.subr.bf16.mxu1 %v1081_v0  ;;  %v748_v17 = vld [vmem:[%s1301_s11] ss:$0 sm:$0xff]  ;;  %s1042_s11 = scalar_lea.vmem %s695_s9, 256 }
  0x75   :  { %771 = vmatprep.subr.bf16.mxu0 %v892_v18  ;;  %p1043_p12 = scmp.ne.s32.totalorder %s695_s9, %s1042_s11  ;;  %p1048_p0 = scmp.lt.s32.totalorder %s1042_s11, %s1042_s11 }
  0x77   :  { %819 = vmatpush3.bf16.msra.mxu1 %v903_v25  ;;  %p1049_p1 = por %p1048_p0, %p1047_p13 }
  0x78   :  { %772 = vmatpush3.bf16.msra.mxu0 %v893_v20  ;;  %820 = vmatprep.subr.bf16.mxu1 %v1081_v0 }
  0x79   :  { %826 = vmatprep.subr.bf16.mxu0 %v1081_v0  ;;  %p1050_p2 = pnand %p1049_p1, %p1043_p12 }
  0x7b   :  { %292 = vmatmul.mubr.bf16.vlgmr.msra.gmra.mrb[0].mxu0 %v894_v22  ;;  %821 = vmatpush3.bf16.msra.mxu1 %v904_v26 }
  0x7c   :  { %842 = vmatprep.mubr.msk.bf16.mxu0 %vm1082_vm0, %v1081_v0  ;;  %846 = vmatprep.subr.bf16.mxu1 %v1081_v0 }
  0x7d   :  { %827 = vmatpush3.bf16.msra.mxu0 %v906_v27 }
  0x7e   :  { %828 = vmatprep.subr.bf16.mxu0 %v1081_v0 }
  0x81   :  { %829 = vmatpush3.bf16.msra.mxu0 %v907_v28 }
  0x82   :  { %830 = vmatprep.subr.bf16.mxu0 %v1081_v0 }
  0x85   :  { %831 = vmatpush3.bf16.msra.mxu0 %v908_v29 }
  0x86   :  { %832 = vmatprep.subr.bf16.mxu0 %v1081_v0 }
  0x89   :  { %833 = vmatpush3.bf16.msra.mxu0 %v909_v30 }
  0x8a   :  { %834 = vmatprep.subr.bf16.mxu0 %v1081_v0 }
  0x8d   :  { %835 = vmatpush3.bf16.msra.mxu0 %v910_v31 }
  0x8e   :  { %836 = vmatprep.subr.bf16.mxu0 %v1081_v0 }
  0x91   :  { %837 = vmatpush3.bf16.msra.mxu0 %v911_v46 }
  0x92   :  { %838 = vmatprep.subr.bf16.mxu0 %v1081_v0 }
  0x95   :  { %839 = vmatpush3.bf16.msra.mxu0 %v912_v47 }
  0x96   :  { %840 = vmatprep.subr.bf16.mxu0 %v1081_v0 }
  0x99   :  { %841 = vmatpush3.bf16.msra.mxu0 %v913_v48 }
 0x14e   :  { %v773_v32 = vpop.f32.mrb[0].mxu0 }
 0x14f   :  { %v774_v33 = vpop.f32.mrb[1].mxu0 }
 0x150   :  { %v775_v34 = vadd.f32 %v774_v33, %v773_v32  ;;  %v776_v35 = vpop.f32.mrb[2].mxu0 }
 0x151   :  { %v777_v37 = vpop.f32.mrb[3].mxu0 }
 0x152   :  { %v778_v38 = vadd.f32 %v777_v37, %v776_v35  ;;  %v294_v39 = vadd.f32 %v775_v34, %v708_v36 }
 0x154   :  { %v297_v40 = vadd.f32 %v778_v38, %v708_v36 }
 0x156   :  { %v300_v41 = vpack.c.bf16 %v297_v40, %v294_v39 }
 0x158   :  { %v302_v43 = vmul.bf16 1045249613, %v300_v41  ;;  %vm301_vm1 = vcmp.gt.bf16.partialorder %v300_v41, 0 }
 0x15a   :  { %v303_v44 = vsel %vm301_vm1, %v300_v41, %v302_v43 }
 0x15b   :  { %v312_v45 = vmul.bf16 %v905_v42, %v303_v44 }
 0x15d   :  { %823 = vmatmul.mubr.bf16.vlgmr.msra.gmra.mrb[0].mxu1 %v312_v45 }
 0x15e   :  { %862 = vmatprep.mubr.msk.bf16.mxu1 %vm1082_vm0, %v1081_v0  ;;  %847 = vmatpush3.bf16.msra.mxu1 %v915_v49 }
 0x15f   :  { %848 = vmatprep.subr.bf16.mxu1 %v1081_v0 }
 0x162   :  { %849 = vmatpush3.bf16.msra.mxu1 %v916_v50 }
 0x163   :  { %850 = vmatprep.subr.bf16.mxu1 %v1081_v0 }
 0x166   :  { %851 = vmatpush3.bf16.msra.mxu1 %v917_v51 }
 0x167   :  { %852 = vmatprep.subr.bf16.mxu1 %v1081_v0 }
 0x16a   :  { %853 = vmatpush3.bf16.msra.mxu1 %v918_v52 }
 0x16b   :  { %854 = vmatprep.subr.bf16.mxu1 %v1081_v0 }
 0x16e   :  { %855 = vmatpush3.bf16.msra.mxu1 %v919_v53 }
 0x16f   :  { %856 = vmatprep.subr.bf16.mxu1 %v1081_v0 }
 0x172   :  { %857 = vmatpush3.bf16.msra.mxu1 %v920_v3 }
 0x173   :  { %858 = vmatprep.subr.bf16.mxu1 %v1081_v0 }
 0x176   :  { %859 = vmatpush3.bf16.msra.mxu1 %v921_v4 }
 0x177   :  { %860 = vmatprep.subr.bf16.mxu1 %v1081_v0 }
 0x17a   :  { %861 = vmatpush3.bf16.msra.mxu1 %v922_v5 }
 0x230   :  { %v418_v55 = vpop.f32.mrb[0].mxu1 }
 0x231   :  { %v824_v56 = vpop.f32.mrb[1].mxu1  ;;  %v419_v58 = vadd.f32 %v728_v54, %v418_v55 }
 0x232   :  { %v421_v57 = vpop.f32.mrb[2].mxu1 }
 0x233   :  { %v422_v59 = vadd.f32 %v728_v54, %v421_v57  ;;  %v825_v60 = vpop.f32.mrb[3].mxu1 }
 0x235   :  { %v425_v61 = vpack.c.bf16 %v422_v59, %v419_v58 }
 0x237   :  { %vm426_vm2 = vcmp.gt.bf16.partialorder %v425_v61, 0  ;;  %v427_v63 = vmul.bf16 1045249613, %v425_v61 }
 0x239   :  { %v428_v1 = vsel %vm426_vm2, %v425_v61, %v427_v63 }
 0x23a   :  { %v437_v2 = vmul.bf16 %v914_v62, %v428_v1 }
 0x23c   :  { %843 = vmatmul.mubr.bf16.vlgmr.msra.gmra.mrb[4].mxu0 %v437_v2 }
 0x30f   :  { %v543_v7 = vpop.f32.mrb[4].mxu0 }
 0x310   :  { %v844_v8 = vpop.f32.mrb[5].mxu0  ;;  %v544_v10 = vadd.f32 %v738_v6, %v543_v7 }
 0x311   :  { %v546_v9 = vpop.f32.mrb[6].mxu0 }
 0x312   :  { %v547_v11 = vadd.f32 %v738_v6, %v546_v9  ;;  %v845_v12 = vpop.f32.mrb[7].mxu0 }
 0x314   :  { %v550_v13 = vpack.c.bf16 %v547_v11, %v544_v10 }
 0x316   :  { %vm551_vm3 = vcmp.gt.bf16.partialorder %v550_v13, 0  ;;  %v552_v15 = vmul.bf16 1045249613, %v550_v13 }
 0x318   :  { %v553_v0 = vsel %vm551_vm3, %v550_v13, %v552_v15 }
 0x319   :  { %v562_v16 = vmul.bf16 %v923_v14, %v553_v0 }
 0x31b   :  { %863 = vmatmul.mubr.bf16.vlgmr.msra.gmra.mrb[4].mxu1 %v562_v16 }
 0x3ee   :  { %v668_v18 = vpop.f32.mrb[4].mxu1 }
 0x3ef   :  { %v669_v19 = vadd.f32 %v748_v17, %v668_v18  ;;  %v864_v20 = vpop.f32.mrb[5].mxu1 }
 0x3f0   :  { %v671_v21 = vpop.f32.mrb[6].mxu1 }
 0x3f1   :  { %v675_v22 = vsub.f32 0.0, %v669_v19  ;;  %v672_v23 = vadd.f32 %v748_v17, %v671_v21  ;;  %v865_v24 = vpop.f32.mrb[7].mxu1 }
 0x3f3   :  { %v677_v25 = vmul.f32 1.442695, %v675_v22  ;;  %v676_v26 = vsub.f32 0.0, %v672_v23 }
 0x3f5   :  { %924 = vpow2.f32 %v677_v25  ;;  %v679_v27 = vmul.f32 1.442695, %v676_v26 }
 0x3f7   :  { %926 = vpow2.f32 %v679_v27 }
 0x3ff   :  { %v925_v28 = vpop.eup %924 }
 0x400   :  { %v681_v29 = vadd.f32 1.0, %v925_v28 }
 0x401   :  { %v927_v30 = vpop.eup %926 }
 0x402   :  { %928 = vrcp.f32 %v681_v29  ;;  %v682_v31 = vadd.f32 1.0, %v927_v30 }
 0x404   :  { %930 = vrcp.f32 %v682_v31 }
 0x40c   :  { %v929_v32 = vpop.eup %928 }
 0x40d   :  { %687 = vst [vmem:[#allocation11] sm:$0xff] %v929_v32 }
 0x40e   :  { %v931_v33 = vpop.eup %930 }
 0x40f   :  { %688 = vst [vmem:[#allocation11 + $0x8] sm:$0xff] %v931_v33 }
 0x410   :  { %1053 = shalt.err (!%p1050_p2)
}
 0x411   :  { %s1054_s25 = scalar_lea.hbm %s1302_s12, 256 }
 0x412   :  { %p1055_p3 = scmp.ne.s32.totalorder %s1302_s12, %s1054_s25  ;;  %p1058_p4 = scmp.lt.u32.totalorder %s1054_s25, %s1302_s12 }
 0x414   :  { %p1060_p5 = pnand %p1058_p4, %p1055_p3 }
 0x416   :  { %1063 = shalt.err (!%p1060_p5)
}
 0x417   :  { %700 = dma.vmem_to_hbm [thread:$0]  %s695_s9, 256, %s1302_s12, [#allocation4], %s1077_s7, %s1077_s7, %s1078_s18  }
 0x418   :  { %1070 = dma.done.wait [#allocation4], 256  }
 0x419   :  { %1071 = vsyncadd [#allocation4], 4294967040 }
 0x41a   :  { %704 = vsyncpa [#allocation3], 1 }
 0x41b   :  { %705 = vsyncpa [#allocation6], 1 }
 0x41c   :  { %706 = vsyncpa [#allocation9], 1 }
 0x41d   :  { %707 = vsyncpa [#allocation4], 1 }

</bundles_post_ra>
